<compile_context>
chip_gen: v7x
topology: tpu7x:2x2x1
jax: 0.10.0
libtpu: 0.0.40
codegen_flags: <defaults>
</compile_context>

<pallas_src>
import functools

import jax
import jax.numpy as jnp
from jax.experimental import pallas as pl
from jax.experimental.pallas import tpu as pltpu


# ---------------------------------------------------------------------------
# Gate nonlinearity (PyTorch gate order: i, f, g, o).
# `gates` = x_t@W_ih + h@W_hh + b.  tanh only on the g slice.
# ---------------------------------------------------------------------------
def _gates_to_hc(gates, c, H):
    sg = jax.nn.sigmoid(gates)                    # full 4H width (3/4 slices used)
    i = sg[:, 0 * H:1 * H]
    f = sg[:, 1 * H:2 * H]
    g = jnp.tanh(gates[:, 2 * H:3 * H])           # narrow tanh only where needed
    o = sg[:, 3 * H:4 * H]
    c_new = f * c + i * g
    h_new = o * jnp.tanh(c_new)
    return h_new, c_new


# ---------------------------------------------------------------------------
# Fused encoder + decoder kernel (single invocation, no grid).
#   x_ref   : (L*BP, 1)      time-major flattened encoder input (batch padded to BP)
#   tgt_ref : (BP, T_out)    decoder targets (feature dim == 1)
#   wcat_ref: (H, 4H+O)      [dec_whh | fc_w] concatenated along lanes
#   pred_ref: (BP, T_out*O)  predictions (reshaped/sliced by the wrapper)
# ---------------------------------------------------------------------------
def seq2seq_kernel(tf_ref, x_ref, tgt_ref,
                   enc_wih_ref, enc_whh_ref, enc_b_ref,
                   dec_wih_ref, dec_b_ref,
                   wcat_ref, fc_b_ref,
                   pred_ref):
    BP, T_out = tgt_ref.shape
    H = enc_whh_ref.shape[0]
    O = fc_b_ref.shape[1]
    LB = x_ref.shape[0]
    L = LB // BP
    H4 = 4 * H

    # ---------------- Encoder ----------------
    # Input projection for all L steps: K=1 outer product -> VPU broadcast multiply.
    gx_all = x_ref[...] * enc_wih_ref[...] + enc_b_ref[...]          # (L*BP, 4H)
    enc_whh = enc_whh_ref[...]

    h = jnp.zeros((BP, H), jnp.float32)
    c = jnp.zeros((BP, H), jnp.float32)
    # Static trip count -> fully unrolled straight-line code; every slice is a
    # full-(8,128)-vreg static VMEM access because BP == 8.
    for t in range(L):
        gx = gx_all[t * BP:(t + 1) * BP, :]
        gates = gx + jnp.dot(h, enc_whh, preferred_element_type=jnp.float32)
        h, c = _gates_to_hc(gates, c, H)

    # ---------------- Decoder (autoregressive, teacher forcing) ----------------
    dec_wih = dec_wih_ref[...]                                        # (1, 4H)
    dec_b = dec_b_ref[...]                                            # (1, 4H)
    wcat = wcat_ref[...]                                              # (H, 4H+O)
    fc_b = fc_b_ref[...]                                              # (1, O)

    # decoder_input = x[:, -1, :] (input_size == output_size == 1 in the torch code)
    inp = x_ref[(L - 1) * BP:L * BP, :]                               # (BP, 1)

    # Prologue: recurrent contribution of the encoder's final hidden state.
    # (last O lanes of `fused` are unused here.)
    fused = jnp.dot(h, wcat, preferred_element_type=jnp.float32)      # (BP, 4H+O)

    outs = []
    for i in range(T_out):
        # Input projection: K=1 -> VPU broadcast multiply (no MXU round trip).
        gx = inp * dec_wih + dec_b                                    # (BP, 4H)
        gates = gx + fused[:, :H4]
        h, c = _gates_to_hc(gates, c, H)
        # One MXU matmul per step: recurrent term for step i+1 AND fc output of step i.
        fused = jnp.dot(h, wcat, preferred_element_type=jnp.float32)  # (BP, 4H+O)
        out = fused[:, H4:H4 + O] + fc_b                              # (BP, O)
        outs.append(out)

        # Teacher forcing: next input is target[:, i] if the pre-drawn flag is set.
        use_tf = tf_ref[i] > 0                                        # scalar from SMEM
        tgt_t = tgt_ref[:, i:i + 1]                                   # (BP, 1); O == 1
        inp = jnp.where(use_tf, tgt_t, out)

    # Single store of all predictions at the end.
    pred_ref[...] = jnp.concatenate(outs, axis=1)                     # (BP, T_out*O)


def seq2seq_forward(tf_flags, x2, tgt, params):
    BP, T_out = tgt.shape
    O = params["fc_w"].shape[1]
    wcat = jnp.concatenate([params["dec_whh"], params["fc_w"]], axis=1)  # (H, 4H+O)

    vmem = pl.BlockSpec(memory_space=pltpu.MemorySpace.VMEM)
    smem = pl.BlockSpec(memory_space=pltpu.MemorySpace.SMEM)
    pred_flat = pl.pallas_call(
        seq2seq_kernel,
        out_shape=jax.ShapeDtypeStruct((BP, T_out * O), jnp.float32),
        in_specs=[smem,              # teacher-forcing flags
                  vmem, vmem,        # x2, target
                  vmem, vmem, vmem,  # encoder: wih, whh, bias
                  vmem, vmem,        # decoder: wih, bias
                  vmem, vmem],       # wcat = [dec_whh | fc_w], fc bias
        out_specs=vmem,
    )(tf_flags, x2, tgt,
      params["enc_wih"], params["enc_whh"], params["enc_b"],
      params["dec_wih"], params["dec_b"],
      wcat, params["fc_b"])
    return pred_flat.reshape(BP, T_out, O)


# ---------------------------------------------------------------------------
# Model wrapper (matches Model.forward semantics)
# ---------------------------------------------------------------------------
def model_forward(params, x, target, teacher_forcing_ratio, tf_key, output_sequence_size):
    bs, L, I = x.shape
    O = params["fc_w"].shape[1]
    # torch code feeds x[:, -1:, :] to a decoder LSTM of input dim output_size,
    # and target[:, i].unsqueeze(-1) has feature dim 1:
    assert I == O, "input_size must equal output_size"
    assert O == 1, "output_size must be 1 (target[:, i].unsqueeze(-1) path)"
    T_out = output_sequence_size

    # Pad batch to a full sublane group (8) so each time-step slice is one (8,128) vreg.
    BP = max(8, ((bs + 7) // 8) * 8)
    pad = BP - bs

    xf = x.astype(jnp.float32)
    if pad:
        xf = jnp.concatenate([xf, jnp.zeros((pad, L, I), jnp.float32)], axis=0)
    # Time-major flatten (rows t-major, b-minor): single batched input projection
    # and a contiguous static slice for x[:, -1, :].
    x2 = jnp.transpose(xf, (1, 0, 2)).reshape(L * BP, I)

    tgt = target.astype(jnp.float32)                                  # (bs, T_out)
    if pad:
        tgt = jnp.concatenate([tgt, jnp.zeros((pad, T_out), jnp.float32)], axis=0)

    # torch draws random.random() per step; we pre-draw deterministic flags.
    tf_flags = (jax.random.uniform(tf_key, (T_out,))
                < teacher_forcing_ratio).astype(jnp.int32)

    pred = seq2seq_forward(tf_flags, x2, tgt, params)                 # (BP, T_out, O)
    return pred[:bs]                                                  # (bs, T_out, O)


# ---------------------------------------------------------------------------
# Pure-JAX reference (mirrors PyTorch nn.LSTM / nn.Linear math)
# ---------------------------------------------------------------------------
def _ref_cell(x, h, c, wih, whh, b, H):
    gates = x @ wih + h @ whh + b
    i = jax.nn.sigmoid(gates[:, 0 * H:1 * H])
    f = jax.nn.sigmoid(gates[:, 1 * H:2 * H])
    g = jnp.tanh(gates[:, 2 * H:3 * H])
    o = jax.nn.sigmoid(gates[:, 3 * H:4 * H])
    c_new = f * c + i * g
    return o * jnp.tanh(c_new), c_new


def model_forward_ref(params, x, target, teacher_forcing_ratio, tf_key, T_out):
    bs, L, I = x.shape
    H = params["enc_whh"].shape[0]
    x_tm = jnp.transpose(x, (1, 0, 2)).astype(jnp.float32)
    h = jnp.zeros((bs, H), jnp.float32)
    c = jnp.zeros((bs, H), jnp.float32)
    for t in range(L):
        h, c = _ref_cell(x_tm[t], h, c, params["enc_wih"], params["enc_whh"],
                         params["enc_b"], H)
    tf_flags = (jax.random.uniform(tf_key, (T_out,)) < teacher_forcing_ratio)
    inp = x_tm[-1]
    preds = []
    for i in range(T_out):
        h, c = _ref_cell(inp, h, c, params["dec_wih"], params["dec_whh"],
                         params["dec_b"], H)
        out = h @ params["fc_w"] + params["fc_b"]
        preds.append(out)
        inp = jnp.where(tf_flags[i], target[:, i:i + 1].astype(jnp.float32), out)
    return jnp.stack(preds, axis=1)   # (bs, T_out, O)


# ---------------------------------------------------------------------------
# Deterministic parameter init (PyTorch-style uniform(-1/sqrt(H), 1/sqrt(H)))
# ---------------------------------------------------------------------------
def init_params(key, input_size, hidden_size, output_size):
    k = 1.0 / jnp.sqrt(hidden_size)
    keys = jax.random.split(key, 10)
    u = lambda kk, shape: jax.random.uniform(kk, shape, jnp.float32, -k, k)
    return {
        # encoder LSTM: weights stored transposed (in_dim, 4H); biases summed.
        "enc_wih": u(keys[0], (input_size, 4 * hidden_size)),
        "enc_whh": u(keys[1], (hidden_size, 4 * hidden_size)),
        "enc_b":   u(keys[2], (1, 4 * hidden_size)) + u(keys[3], (1, 4 * hidden_size)),
        # decoder LSTM (input dim = output_size)
        "dec_wih": u(keys[4], (output_size, 4 * hidden_size)),
        "dec_whh": u(keys[5], (hidden_size, 4 * hidden_size)),
        "dec_b":   u(keys[6], (1, 4 * hidden_size)) + u(keys[7], (1, 4 * hidden_size)),
        # fc: Linear(hidden_size, output_size), stored transposed (H, O)
        "fc_w":    u(keys[8], (hidden_size, output_size)),
        "fc_b":    u(keys[9], (1, output_size)),
    }


if __name__ == "__main__":
    # Small config consistent with the module: input_size == output_size == 1.
    bs, L, T_out = 2, 8, 4
    input_size, hidden_size, output_size = 1, 32, 1
    teacher_forcing_ratio = 0.5

    root = jax.random.PRNGKey(0)
    kp, kx, kt, ktf = jax.random.split(root, 4)

    params = init_params(kp, input_size, hidden_size, output_size)
    x = jax.random.normal(kx, (bs, L, input_size), jnp.float32)
    target = jax.random.normal(kt, (bs, T_out), jnp.float32)

    run = jax.jit(functools.partial(model_forward,
                                    teacher_forcing_ratio=teacher_forcing_ratio,
                                    tf_key=ktf,
                                    output_sequence_size=T_out))
    pred = run(params, x, target)
    pred = jax.block_until_ready(pred)

    ref = model_forward_ref(params, x, target, teacher_forcing_ratio, ktf, T_out)
    assert pred.shape == (bs, T_out, output_size), pred.shape
    assert jnp.allclose(pred, ref, atol=1e-3, rtol=1e-3), (pred, ref)

    print("KERNEL_OK")
</pallas_src>

<mosaic_0001>
module attributes {stable_mosaic.version = 11 : i64} {
  func.func @seq2seq_kernel(%arg0: memref<4xi32, #tpu.memory_space<smem>>, %arg1: memref<64x1xf32, #tpu.memory_space<vmem>>, %arg2: memref<8x4xf32, #tpu.memory_space<vmem>>, %arg3: memref<1x128xf32, #tpu.memory_space<vmem>>, %arg4: memref<32x128xf32, #tpu.memory_space<vmem>>, %arg5: memref<1x128xf32, #tpu.memory_space<vmem>>, %arg6: memref<1x128xf32, #tpu.memory_space<vmem>>, %arg7: memref<1x128xf32, #tpu.memory_space<vmem>>, %arg8: memref<32x129xf32, #tpu.memory_space<vmem>>, %arg9: memref<1x1xf32, #tpu.memory_space<vmem>>, %arg10: memref<8x4xf32, #tpu.memory_space<vmem>>) attributes {dimension_semantics = [], scalar_prefetch = 0 : i64, scratch_operands = 0 : i64, tpu.core_type = #tpu.core_type<tc>} {
    %c0 = arith.constant 0 : index
    %c0_0 = arith.constant 0 : index
    %0 = vector.load %arg1[%c0, %c0_0] : memref<64x1xf32, #tpu.memory_space<vmem>>, vector<64x1xf32>
    %c0_1 = arith.constant 0 : index
    %c0_2 = arith.constant 0 : index
    %1 = vector.load %arg3[%c0_1, %c0_2] : memref<1x128xf32, #tpu.memory_space<vmem>>, vector<1x128xf32>
    %2 = vector.broadcast %0 : vector<64x1xf32> to vector<64x128xf32>
    %3 = vector.broadcast %1 : vector<1x128xf32> to vector<64x128xf32>
    %4 = arith.mulf %2, %3 : vector<64x128xf32>
    %c0_3 = arith.constant 0 : index
    %c0_4 = arith.constant 0 : index
    %5 = vector.load %arg5[%c0_3, %c0_4] : memref<1x128xf32, #tpu.memory_space<vmem>>, vector<1x128xf32>
    %6 = vector.broadcast %5 : vector<1x128xf32> to vector<64x128xf32>
    %7 = arith.addf %4, %6 : vector<64x128xf32>
    %c0_5 = arith.constant 0 : index
    %c0_6 = arith.constant 0 : index
    %8 = vector.load %arg4[%c0_5, %c0_6] : memref<32x128xf32, #tpu.memory_space<vmem>>, vector<32x128xf32>
    %cst = arith.constant 0.000000e+00 : f32
    %9 = vector.broadcast %cst : f32 to vector<8x32xf32>
    %cst_7 = arith.constant 0.000000e+00 : f32
    %10 = vector.broadcast %cst_7 : f32 to vector<8x32xf32>
    %11 = vector.extract_strided_slice %7 {offsets = [0, 0], sizes = [8, 128], strides = [1, 1]} : vector<64x128xf32> to vector<8x128xf32>
    %cst_8 = arith.constant dense<0.000000e+00> : vector<8x128xf32>
    %12 = tpu.matmul %9, %8, %cst_8 {dimension_numbers = #tpu.dot_dimension_numbers<[1], [0], [0], [1], [0, 0, 1, 1], [], []>} : vector<8x32xf32>, vector<32x128xf32>, vector<8x128xf32> -> vector<8x128xf32>
    %13 = arith.addf %11, %12 : vector<8x128xf32>
    %14 = arith.negf %13 : vector<8x128xf32>
    %15 = math.exp %14 : vector<8x128xf32>
    %cst_9 = arith.constant 1.000000e+00 : f32
    %16 = vector.broadcast %cst_9 : f32 to vector<8x128xf32>
    %17 = arith.addf %16, %15 : vector<8x128xf32>
    %18 = arith.divf %16, %17 : vector<8x128xf32>
    %19 = vector.extract_strided_slice %18 {offsets = [0, 0], sizes = [8, 32], strides = [1, 1]} : vector<8x128xf32> to vector<8x32xf32>
    %20 = vector.extract_strided_slice %18 {offsets = [0, 32], sizes = [8, 32], strides = [1, 1]} : vector<8x128xf32> to vector<8x32xf32>
    %21 = vector.extract_strided_slice %13 {offsets = [0, 64], sizes = [8, 32], strides = [1, 1]} : vector<8x128xf32> to vector<8x32xf32>
    %22 = math.tanh %21 : vector<8x32xf32>
    %23 = vector.extract_strided_slice %18 {offsets = [0, 96], sizes = [8, 32], strides = [1, 1]} : vector<8x128xf32> to vector<8x32xf32>
    %24 = arith.mulf %20, %10 : vector<8x32xf32>
    %25 = arith.mulf %19, %22 : vector<8x32xf32>
    %26 = arith.addf %24, %25 : vector<8x32xf32>
    %27 = math.tanh %26 : vector<8x32xf32>
    %28 = arith.mulf %23, %27 : vector<8x32xf32>
    %29 = vector.extract_strided_slice %7 {offsets = [8, 0], sizes = [8, 128], strides = [1, 1]} : vector<64x128xf32> to vector<8x128xf32>
    %cst_10 = arith.constant dense<0.000000e+00> : vector<8x128xf32>
    %30 = tpu.matmul %28, %8, %cst_10 {dimension_numbers = #tpu.dot_dimension_numbers<[1], [0], [0], [1], [0, 0, 1, 1], [], []>} : vector<8x32xf32>, vector<32x128xf32>, vector<8x128xf32> -> vector<8x128xf32>
    %31 = arith.addf %29, %30 : vector<8x128xf32>
    %32 = arith.negf %31 : vector<8x128xf32>
    %33 = math.exp %32 : vector<8x128xf32>
    %cst_11 = arith.constant 1.000000e+00 : f32
    %34 = vector.broadcast %cst_11 : f32 to vector<8x128xf32>
    %35 = arith.addf %34, %33 : vector<8x128xf32>
    %36 = arith.divf %34, %35 : vector<8x128xf32>
    %37 = vector.extract_strided_slice %36 {offsets = [0, 0], sizes = [8, 32], strides = [1, 1]} : vector<8x128xf32> to vector<8x32xf32>
    %38 = vector.extract_strided_slice %36 {offsets = [0, 32], sizes = [8, 32], strides = [1, 1]} : vector<8x128xf32> to vector<8x32xf32>
    %39 = vector.extract_strided_slice %31 {offsets = [0, 64], sizes = [8, 32], strides = [1, 1]} : vector<8x128xf32> to vector<8x32xf32>
    %40 = math.tanh %39 : vector<8x32xf32>
    %41 = vector.extract_strided_slice %36 {offsets = [0, 96], sizes = [8, 32], strides = [1, 1]} : vector<8x128xf32> to vector<8x32xf32>
    %42 = arith.mulf %38, %26 : vector<8x32xf32>
    %43 = arith.mulf %37, %40 : vector<8x32xf32>
    %44 = arith.addf %42, %43 : vector<8x32xf32>
    %45 = math.tanh %44 : vector<8x32xf32>
    %46 = arith.mulf %41, %45 : vector<8x32xf32>
    %47 = vector.extract_strided_slice %7 {offsets = [16, 0], sizes = [8, 128], strides = [1, 1]} : vector<64x128xf32> to vector<8x128xf32>
    %cst_12 = arith.constant dense<0.000000e+00> : vector<8x128xf32>
    %48 = tpu.matmul %46, %8, %cst_12 {dimension_numbers = #tpu.dot_dimension_numbers<[1], [0], [0], [1], [0, 0, 1, 1], [], []>} : vector<8x32xf32>, vector<32x128xf32>, vector<8x128xf32> -> vector<8x128xf32>
    %49 = arith.addf %47, %48 : vector<8x128xf32>
    %50 = arith.negf %49 : vector<8x128xf32>
    %51 = math.exp %50 : vector<8x128xf32>
    %cst_13 = arith.constant 1.000000e+00 : f32
    %52 = vector.broadcast %cst_13 : f32 to vector<8x128xf32>
    %53 = arith.addf %52, %51 : vector<8x128xf32>
    %54 = arith.divf %52, %53 : vector<8x128xf32>
    %55 = vector.extract_strided_slice %54 {offsets = [0, 0], sizes = [8, 32], strides = [1, 1]} : vector<8x128xf32> to vector<8x32xf32>
    %56 = vector.extract_strided_slice %54 {offsets = [0, 32], sizes = [8, 32], strides = [1, 1]} : vector<8x128xf32> to vector<8x32xf32>
    %57 = vector.extract_strided_slice %49 {offsets = [0, 64], sizes = [8, 32], strides = [1, 1]} : vector<8x128xf32> to vector<8x32xf32>
    %58 = math.tanh %57 : vector<8x32xf32>
    %59 = vector.extract_strided_slice %54 {offsets = [0, 96], sizes = [8, 32], strides = [1, 1]} : vector<8x128xf32> to vector<8x32xf32>
    %60 = arith.mulf %56, %44 : vector<8x32xf32>
    %61 = arith.mulf %55, %58 : vector<8x32xf32>
    %62 = arith.addf %60, %61 : vector<8x32xf32>
    %63 = math.tanh %62 : vector<8x32xf32>
    %64 = arith.mulf %59, %63 : vector<8x32xf32>
    %65 = vector.extract_strided_slice %7 {offsets = [24, 0], sizes = [8, 128], strides = [1, 1]} : vector<64x128xf32> to vector<8x128xf32>
    %cst_14 = arith.constant dense<0.000000e+00> : vector<8x128xf32>
    %66 = tpu.matmul %64, %8, %cst_14 {dimension_numbers = #tpu.dot_dimension_numbers<[1], [0], [0], [1], [0, 0, 1, 1], [], []>} : vector<8x32xf32>, vector<32x128xf32>, vector<8x128xf32> -> vector<8x128xf32>
    %67 = arith.addf %65, %66 : vector<8x128xf32>
    %68 = arith.negf %67 : vector<8x128xf32>
    %69 = math.exp %68 : vector<8x128xf32>
    %cst_15 = arith.constant 1.000000e+00 : f32
    %70 = vector.broadcast %cst_15 : f32 to vector<8x128xf32>
    %71 = arith.addf %70, %69 : vector<8x128xf32>
    %72 = arith.divf %70, %71 : vector<8x128xf32>
    %73 = vector.extract_strided_slice %72 {offsets = [0, 0], sizes = [8, 32], strides = [1, 1]} : vector<8x128xf32> to vector<8x32xf32>
    %74 = vector.extract_strided_slice %72 {offsets = [0, 32], sizes = [8, 32], strides = [1, 1]} : vector<8x128xf32> to vector<8x32xf32>
    %75 = vector.extract_strided_slice %67 {offsets = [0, 64], sizes = [8, 32], strides = [1, 1]} : vector<8x128xf32> to vector<8x32xf32>
    %76 = math.tanh %75 : vector<8x32xf32>
    %77 = vector.extract_strided_slice %72 {offsets = [0, 96], sizes = [8, 32], strides = [1, 1]} : vector<8x128xf32> to vector<8x32xf32>
    %78 = arith.mulf %74, %62 : vector<8x32xf32>
    %79 = arith.mulf %73, %76 : vector<8x32xf32>
    %80 = arith.addf %78, %79 : vector<8x32xf32>
    %81 = math.tanh %80 : vector<8x32xf32>
    %82 = arith.mulf %77, %81 : vector<8x32xf32>
    %83 = vector.extract_strided_slice %7 {offsets = [32, 0], sizes = [8, 128], strides = [1, 1]} : vector<64x128xf32> to vector<8x128xf32>
    %cst_16 = arith.constant dense<0.000000e+00> : vector<8x128xf32>
    %84 = tpu.matmul %82, %8, %cst_16 {dimension_numbers = #tpu.dot_dimension_numbers<[1], [0], [0], [1], [0, 0, 1, 1], [], []>} : vector<8x32xf32>, vector<32x128xf32>, vector<8x128xf32> -> vector<8x128xf32>
    %85 = arith.addf %83, %84 : vector<8x128xf32>
    %86 = arith.negf %85 : vector<8x128xf32>
    %87 = math.exp %86 : vector<8x128xf32>
    %cst_17 = arith.constant 1.000000e+00 : f32
    %88 = vector.broadcast %cst_17 : f32 to vector<8x128xf32>
    %89 = arith.addf %88, %87 : vector<8x128xf32>
    %90 = arith.divf %88, %89 : vector<8x128xf32>
    %91 = vector.extract_strided_slice %90 {offsets = [0, 0], sizes = [8, 32], strides = [1, 1]} : vector<8x128xf32> to vector<8x32xf32>
    %92 = vector.extract_strided_slice %90 {offsets = [0, 32], sizes = [8, 32], strides = [1, 1]} : vector<8x128xf32> to vector<8x32xf32>
    %93 = vector.extract_strided_slice %85 {offsets = [0, 64], sizes = [8, 32], strides = [1, 1]} : vector<8x128xf32> to vector<8x32xf32>
    %94 = math.tanh %93 : vector<8x32xf32>
    %95 = vector.extract_strided_slice %90 {offsets = [0, 96], sizes = [8, 32], strides = [1, 1]} : vector<8x128xf32> to vector<8x32xf32>
    %96 = arith.mulf %92, %80 : vector<8x32xf32>
    %97 = arith.mulf %91, %94 : vector<8x32xf32>
    %98 = arith.addf %96, %97 : vector<8x32xf32>
    %99 = math.tanh %98 : vector<8x32xf32>
    %100 = arith.mulf %95, %99 : vector<8x32xf32>
    %101 = vector.extract_strided_slice %7 {offsets = [40, 0], sizes = [8, 128], strides = [1, 1]} : vector<64x128xf32> to vector<8x128xf32>
    %cst_18 = arith.constant dense<0.000000e+00> : vector<8x128xf32>
    %102 = tpu.matmul %100, %8, %cst_18 {dimension_numbers = #tpu.dot_dimension_numbers<[1], [0], [0], [1], [0, 0, 1, 1], [], []>} : vector<8x32xf32>, vector<32x128xf32>, vector<8x128xf32> -> vector<8x128xf32>
    %103 = arith.addf %101, %102 : vector<8x128xf32>
    %104 = arith.negf %103 : vector<8x128xf32>
    %105 = math.exp %104 : vector<8x128xf32>
    %cst_19 = arith.constant 1.000000e+00 : f32
    %106 = vector.broadcast %cst_19 : f32 to vector<8x128xf32>
    %107 = arith.addf %106, %105 : vector<8x128xf32>
    %108 = arith.divf %106, %107 : vector<8x128xf32>
    %109 = vector.extract_strided_slice %108 {offsets = [0, 0], sizes = [8, 32], strides = [1, 1]} : vector<8x128xf32> to vector<8x32xf32>
    %110 = vector.extract_strided_slice %108 {offsets = [0, 32], sizes = [8, 32], strides = [1, 1]} : vector<8x128xf32> to vector<8x32xf32>
    %111 = vector.extract_strided_slice %103 {offsets = [0, 64], sizes = [8, 32], strides = [1, 1]} : vector<8x128xf32> to vector<8x32xf32>
    %112 = math.tanh %111 : vector<8x32xf32>
    %113 = vector.extract_strided_slice %108 {offsets = [0, 96], sizes = [8, 32], strides = [1, 1]} : vector<8x128xf32> to vector<8x32xf32>
    %114 = arith.mulf %110, %98 : vector<8x32xf32>
    %115 = arith.mulf %109, %112 : vector<8x32xf32>
    %116 = arith.addf %114, %115 : vector<8x32xf32>
    %117 = math.tanh %116 : vector<8x32xf32>
    %118 = arith.mulf %113, %117 : vector<8x32xf32>
    %119 = vector.extract_strided_slice %7 {offsets = [48, 0], sizes = [8, 128], strides = [1, 1]} : vector<64x128xf32> to vector<8x128xf32>
    %cst_20 = arith.constant dense<0.000000e+00> : vector<8x128xf32>
    %120 = tpu.matmul %118, %8, %cst_20 {dimension_numbers = #tpu.dot_dimension_numbers<[1], [0], [0], [1], [0, 0, 1, 1], [], []>} : vector<8x32xf32>, vector<32x128xf32>, vector<8x128xf32> -> vector<8x128xf32>
    %121 = arith.addf %119, %120 : vector<8x128xf32>
    %122 = arith.negf %121 : vector<8x128xf32>
    %123 = math.exp %122 : vector<8x128xf32>
    %cst_21 = arith.constant 1.000000e+00 : f32
    %124 = vector.broadcast %cst_21 : f32 to vector<8x128xf32>
    %125 = arith.addf %124, %123 : vector<8x128xf32>
    %126 = arith.divf %124, %125 : vector<8x128xf32>
    %127 = vector.extract_strided_slice %126 {offsets = [0, 0], sizes = [8, 32], strides = [1, 1]} : vector<8x128xf32> to vector<8x32xf32>
    %128 = vector.extract_strided_slice %126 {offsets = [0, 32], sizes = [8, 32], strides = [1, 1]} : vector<8x128xf32> to vector<8x32xf32>
    %129 = vector.extract_strided_slice %121 {offsets = [0, 64], sizes = [8, 32], strides = [1, 1]} : vector<8x128xf32> to vector<8x32xf32>
    %130 = math.tanh %129 : vector<8x32xf32>
    %131 = vector.extract_strided_slice %126 {offsets = [0, 96], sizes = [8, 32], strides = [1, 1]} : vector<8x128xf32> to vector<8x32xf32>
    %132 = arith.mulf %128, %116 : vector<8x32xf32>
    %133 = arith.mulf %127, %130 : vector<8x32xf32>
    %134 = arith.addf %132, %133 : vector<8x32xf32>
    %135 = math.tanh %134 : vector<8x32xf32>
    %136 = arith.mulf %131, %135 : vector<8x32xf32>
    %137 = vector.extract_strided_slice %7 {offsets = [56, 0], sizes = [8, 128], strides = [1, 1]} : vector<64x128xf32> to vector<8x128xf32>
    %cst_22 = arith.constant dense<0.000000e+00> : vector<8x128xf32>
    %138 = tpu.matmul %136, %8, %cst_22 {dimension_numbers = #tpu.dot_dimension_numbers<[1], [0], [0], [1], [0, 0, 1, 1], [], []>} : vector<8x32xf32>, vector<32x128xf32>, vector<8x128xf32> -> vector<8x128xf32>
    %139 = arith.addf %137, %138 : vector<8x128xf32>
    %140 = arith.negf %139 : vector<8x128xf32>
    %141 = math.exp %140 : vector<8x128xf32>
    %cst_23 = arith.constant 1.000000e+00 : f32
    %142 = vector.broadcast %cst_23 : f32 to vector<8x128xf32>
    %143 = arith.addf %142, %141 : vector<8x128xf32>
    %144 = arith.divf %142, %143 : vector<8x128xf32>
    %145 = vector.extract_strided_slice %144 {offsets = [0, 0], sizes = [8, 32], strides = [1, 1]} : vector<8x128xf32> to vector<8x32xf32>
    %146 = vector.extract_strided_slice %144 {offsets = [0, 32], sizes = [8, 32], strides = [1, 1]} : vector<8x128xf32> to vector<8x32xf32>
    %147 = vector.extract_strided_slice %139 {offsets = [0, 64], sizes = [8, 32], strides = [1, 1]} : vector<8x128xf32> to vector<8x32xf32>
    %148 = math.tanh %147 : vector<8x32xf32>
    %149 = vector.extract_strided_slice %144 {offsets = [0, 96], sizes = [8, 32], strides = [1, 1]} : vector<8x128xf32> to vector<8x32xf32>
    %150 = arith.mulf %146, %134 : vector<8x32xf32>
    %151 = arith.mulf %145, %148 : vector<8x32xf32>
    %152 = arith.addf %150, %151 : vector<8x32xf32>
    %153 = math.tanh %152 : vector<8x32xf32>
    %154 = arith.mulf %149, %153 : vector<8x32xf32>
    %c0_24 = arith.constant 0 : index
    %c0_25 = arith.constant 0 : index
    %155 = vector.load %arg6[%c0_24, %c0_25] : memref<1x128xf32, #tpu.memory_space<vmem>>, vector<1x128xf32>
    %c0_26 = arith.constant 0 : index
    %c0_27 = arith.constant 0 : index
    %156 = vector.load %arg7[%c0_26, %c0_27] : memref<1x128xf32, #tpu.memory_space<vmem>>, vector<1x128xf32>
    %c0_28 = arith.constant 0 : index
    %c0_29 = arith.constant 0 : index
    %157 = vector.load %arg8[%c0_28, %c0_29] : memref<32x129xf32, #tpu.memory_space<vmem>>, vector<32x129xf32>
    %c0_30 = arith.constant 0 : index
    %c0_31 = arith.constant 0 : index
    %158 = vector.load %arg9[%c0_30, %c0_31] : memref<1x1xf32, #tpu.memory_space<vmem>>, vector<1x1xf32>
    %c56 = arith.constant 56 : index
    %c0_32 = arith.constant 0 : index
    %159 = vector.load %arg1[%c56, %c0_32] : memref<64x1xf32, #tpu.memory_space<vmem>>, vector<8x1xf32>
    %cst_33 = arith.constant dense<0.000000e+00> : vector<8x129xf32>
    %160 = tpu.matmul %154, %157, %cst_33 {dimension_numbers = #tpu.dot_dimension_numbers<[1], [0], [0], [1], [0, 0, 1, 1], [], []>} : vector<8x32xf32>, vector<32x129xf32>, vector<8x129xf32> -> vector<8x129xf32>
    %161 = vector.broadcast %159 : vector<8x1xf32> to vector<8x128xf32>
    %162 = vector.broadcast %155 : vector<1x128xf32> to vector<8x128xf32>
    %163 = arith.mulf %161, %162 : vector<8x128xf32>
    %164 = vector.broadcast %156 : vector<1x128xf32> to vector<8x128xf32>
    %165 = arith.addf %163, %164 : vector<8x128xf32>
    %166 = vector.extract_strided_slice %160 {offsets = [0, 0], sizes = [8, 128], strides = [1, 1]} : vector<8x129xf32> to vector<8x128xf32>
    %167 = arith.addf %165, %166 : vector<8x128xf32>
    %168 = arith.negf %167 : vector<8x128xf32>
    %169 = math.exp %168 : vector<8x128xf32>
    %cst_34 = arith.constant 1.000000e+00 : f32
    %170 = vector.broadcast %cst_34 : f32 to vector<8x128xf32>
    %171 = arith.addf %170, %169 : vector<8x128xf32>
    %172 = arith.divf %170, %171 : vector<8x128xf32>
    %173 = vector.extract_strided_slice %172 {offsets = [0, 0], sizes = [8, 32], strides = [1, 1]} : vector<8x128xf32> to vector<8x32xf32>
    %174 = vector.extract_strided_slice %172 {offsets = [0, 32], sizes = [8, 32], strides = [1, 1]} : vector<8x128xf32> to vector<8x32xf32>
    %175 = vector.extract_strided_slice %167 {offsets = [0, 64], sizes = [8, 32], strides = [1, 1]} : vector<8x128xf32> to vector<8x32xf32>
    %176 = math.tanh %175 : vector<8x32xf32>
    %177 = vector.extract_strided_slice %172 {offsets = [0, 96], sizes = [8, 32], strides = [1, 1]} : vector<8x128xf32> to vector<8x32xf32>
    %178 = arith.mulf %174, %152 : vector<8x32xf32>
    %179 = arith.mulf %173, %176 : vector<8x32xf32>
    %180 = arith.addf %178, %179 : vector<8x32xf32>
    %181 = math.tanh %180 : vector<8x32xf32>
    %182 = arith.mulf %177, %181 : vector<8x32xf32>
    %cst_35 = arith.constant dense<0.000000e+00> : vector<8x129xf32>
    %183 = tpu.matmul %182, %157, %cst_35 {dimension_numbers = #tpu.dot_dimension_numbers<[1], [0], [0], [1], [0, 0, 1, 1], [], []>} : vector<8x32xf32>, vector<32x129xf32>, vector<8x129xf32> -> vector<8x129xf32>
    %184 = vector.extract_strided_slice %183 {offsets = [0, 128], sizes = [8, 1], strides = [1, 1]} : vector<8x129xf32> to vector<8x1xf32>
    %185 = vector.broadcast %158 : vector<1x1xf32> to vector<8x1xf32>
    %186 = arith.addf %184, %185 : vector<8x1xf32>
    %c0_36 = arith.constant 0 : index
    %187 = memref.load %arg0[%c0_36] : memref<4xi32, #tpu.memory_space<smem>>
    %c0_i32 = arith.constant 0 : i32
    %188 = arith.cmpi sgt, %187, %c0_i32 : i32
    %c0_37 = arith.constant 0 : index
    %c0_38 = arith.constant 0 : index
    %189 = vector.load %arg2[%c0_37, %c0_38] : memref<8x4xf32, #tpu.memory_space<vmem>>, vector<8x1xf32>
    %190 = arith.select %188, %189, %186 : vector<8x1xf32>
    %191 = vector.broadcast %190 : vector<8x1xf32> to vector<8x128xf32>
    %192 = vector.broadcast %155 : vector<1x128xf32> to vector<8x128xf32>
    %193 = arith.mulf %191, %192 : vector<8x128xf32>
    %194 = vector.broadcast %156 : vector<1x128xf32> to vector<8x128xf32>
    %195 = arith.addf %193, %194 : vector<8x128xf32>
    %196 = vector.extract_strided_slice %183 {offsets = [0, 0], sizes = [8, 128], strides = [1, 1]} : vector<8x129xf32> to vector<8x128xf32>
    %197 = arith.addf %195, %196 : vector<8x128xf32>
    %198 = arith.negf %197 : vector<8x128xf32>
    %199 = math.exp %198 : vector<8x128xf32>
    %cst_39 = arith.constant 1.000000e+00 : f32
    %200 = vector.broadcast %cst_39 : f32 to vector<8x128xf32>
    %201 = arith.addf %200, %199 : vector<8x128xf32>
    %202 = arith.divf %200, %201 : vector<8x128xf32>
    %203 = vector.extract_strided_slice %202 {offsets = [0, 0], sizes = [8, 32], strides = [1, 1]} : vector<8x128xf32> to vector<8x32xf32>
    %204 = vector.extract_strided_slice %202 {offsets = [0, 32], sizes = [8, 32], strides = [1, 1]} : vector<8x128xf32> to vector<8x32xf32>
    %205 = vector.extract_strided_slice %197 {offsets = [0, 64], sizes = [8, 32], strides = [1, 1]} : vector<8x128xf32> to vector<8x32xf32>
    %206 = math.tanh %205 : vector<8x32xf32>
    %207 = vector.extract_strided_slice %202 {offsets = [0, 96], sizes = [8, 32], strides = [1, 1]} : vector<8x128xf32> to vector<8x32xf32>
    %208 = arith.mulf %204, %180 : vector<8x32xf32>
    %209 = arith.mulf %203, %206 : vector<8x32xf32>
    %210 = arith.addf %208, %209 : vector<8x32xf32>
    %211 = math.tanh %210 : vector<8x32xf32>
    %212 = arith.mulf %207, %211 : vector<8x32xf32>
    %cst_40 = arith.constant dense<0.000000e+00> : vector<8x129xf32>
    %213 = tpu.matmul %212, %157, %cst_40 {dimension_numbers = #tpu.dot_dimension_numbers<[1], [0], [0], [1], [0, 0, 1, 1], [], []>} : vector<8x32xf32>, vector<32x129xf32>, vector<8x129xf32> -> vector<8x129xf32>
    %214 = vector.extract_strided_slice %213 {offsets = [0, 128], sizes = [8, 1], strides = [1, 1]} : vector<8x129xf32> to vector<8x1xf32>
    %215 = vector.broadcast %158 : vector<1x1xf32> to vector<8x1xf32>
    %216 = arith.addf %214, %215 : vector<8x1xf32>
    %c1 = arith.constant 1 : index
    %217 = memref.load %arg0[%c1] : memref<4xi32, #tpu.memory_space<smem>>
    %c0_i32_41 = arith.constant 0 : i32
    %218 = arith.cmpi sgt, %217, %c0_i32_41 : i32
    %c0_42 = arith.constant 0 : index
    %c1_43 = arith.constant 1 : index
    %219 = vector.load %arg2[%c0_42, %c1_43] : memref<8x4xf32, #tpu.memory_space<vmem>>, vector<8x1xf32>
    %220 = arith.select %218, %219, %216 : vector<8x1xf32>
    %221 = vector.broadcast %220 : vector<8x1xf32> to vector<8x128xf32>
    %222 = vector.broadcast %155 : vector<1x128xf32> to vector<8x128xf32>
    %223 = arith.mulf %221, %222 : vector<8x128xf32>
    %224 = vector.broadcast %156 : vector<1x128xf32> to vector<8x128xf32>
    %225 = arith.addf %223, %224 : vector<8x128xf32>
    %226 = vector.extract_strided_slice %213 {offsets = [0, 0], sizes = [8, 128], strides = [1, 1]} : vector<8x129xf32> to vector<8x128xf32>
    %227 = arith.addf %225, %226 : vector<8x128xf32>
    %228 = arith.negf %227 : vector<8x128xf32>
    %229 = math.exp %228 : vector<8x128xf32>
    %cst_44 = arith.constant 1.000000e+00 : f32
    %230 = vector.broadcast %cst_44 : f32 to vector<8x128xf32>
    %231 = arith.addf %230, %229 : vector<8x128xf32>
    %232 = arith.divf %230, %231 : vector<8x128xf32>
    %233 = vector.extract_strided_slice %232 {offsets = [0, 0], sizes = [8, 32], strides = [1, 1]} : vector<8x128xf32> to vector<8x32xf32>
    %234 = vector.extract_strided_slice %232 {offsets = [0, 32], sizes = [8, 32], strides = [1, 1]} : vector<8x128xf32> to vector<8x32xf32>
    %235 = vector.extract_strided_slice %227 {offsets = [0, 64], sizes = [8, 32], strides = [1, 1]} : vector<8x128xf32> to vector<8x32xf32>
    %236 = math.tanh %235 : vector<8x32xf32>
    %237 = vector.extract_strided_slice %232 {offsets = [0, 96], sizes = [8, 32], strides = [1, 1]} : vector<8x128xf32> to vector<8x32xf32>
    %238 = arith.mulf %234, %210 : vector<8x32xf32>
    %239 = arith.mulf %233, %236 : vector<8x32xf32>
    %240 = arith.addf %238, %239 : vector<8x32xf32>
    %241 = math.tanh %240 : vector<8x32xf32>
    %242 = arith.mulf %237, %241 : vector<8x32xf32>
    %cst_45 = arith.constant dense<0.000000e+00> : vector<8x129xf32>
    %243 = tpu.matmul %242, %157, %cst_45 {dimension_numbers = #tpu.dot_dimension_numbers<[1], [0], [0], [1], [0, 0, 1, 1], [], []>} : vector<8x32xf32>, vector<32x129xf32>, vector<8x129xf32> -> vector<8x129xf32>
    %244 = vector.extract_strided_slice %243 {offsets = [0, 128], sizes = [8, 1], strides = [1, 1]} : vector<8x129xf32> to vector<8x1xf32>
    %245 = vector.broadcast %158 : vector<1x1xf32> to vector<8x1xf32>
    %246 = arith.addf %244, %245 : vector<8x1xf32>
    %c2 = arith.constant 2 : index
    %247 = memref.load %arg0[%c2] : memref<4xi32, #tpu.memory_space<smem>>
    %c0_i32_46 = arith.constant 0 : i32
    %248 = arith.cmpi sgt, %247, %c0_i32_46 : i32
    %c0_47 = arith.constant 0 : index
    %c2_48 = arith.constant 2 : index
    %249 = vector.load %arg2[%c0_47, %c2_48] : memref<8x4xf32, #tpu.memory_space<vmem>>, vector<8x1xf32>
    %250 = arith.select %248, %249, %246 : vector<8x1xf32>
    %251 = vector.broadcast %250 : vector<8x1xf32> to vector<8x128xf32>
    %252 = vector.broadcast %155 : vector<1x128xf32> to vector<8x128xf32>
    %253 = arith.mulf %251, %252 : vector<8x128xf32>
    %254 = vector.broadcast %156 : vector<1x128xf32> to vector<8x128xf32>
    %255 = arith.addf %253, %254 : vector<8x128xf32>
    %256 = vector.extract_strided_slice %243 {offsets = [0, 0], sizes = [8, 128], strides = [1, 1]} : vector<8x129xf32> to vector<8x128xf32>
    %257 = arith.addf %255, %256 : vector<8x128xf32>
    %258 = arith.negf %257 : vector<8x128xf32>
    %259 = math.exp %258 : vector<8x128xf32>
    %cst_49 = arith.constant 1.000000e+00 : f32
    %260 = vector.broadcast %cst_49 : f32 to vector<8x128xf32>
    %261 = arith.addf %260, %259 : vector<8x128xf32>
    %262 = arith.divf %260, %261 : vector<8x128xf32>
    %263 = vector.extract_strided_slice %262 {offsets = [0, 0], sizes = [8, 32], strides = [1, 1]} : vector<8x128xf32> to vector<8x32xf32>
    %264 = vector.extract_strided_slice %262 {offsets = [0, 32], sizes = [8, 32], strides = [1, 1]} : vector<8x128xf32> to vector<8x32xf32>
    %265 = vector.extract_strided_slice %257 {offsets = [0, 64], sizes = [8, 32], strides = [1, 1]} : vector<8x128xf32> to vector<8x32xf32>
    %266 = math.tanh %265 : vector<8x32xf32>
    %267 = vector.extract_strided_slice %262 {offsets = [0, 96], sizes = [8, 32], strides = [1, 1]} : vector<8x128xf32> to vector<8x32xf32>
    %268 = arith.mulf %264, %240 : vector<8x32xf32>
    %269 = arith.mulf %263, %266 : vector<8x32xf32>
    %270 = arith.addf %268, %269 : vector<8x32xf32>
    %271 = math.tanh %270 : vector<8x32xf32>
    %272 = arith.mulf %267, %271 : vector<8x32xf32>
    %cst_50 = arith.constant dense<0.000000e+00> : vector<8x129xf32>
    %273 = tpu.matmul %272, %157, %cst_50 {dimension_numbers = #tpu.dot_dimension_numbers<[1], [0], [0], [1], [0, 0, 1, 1], [], []>} : vector<8x32xf32>, vector<32x129xf32>, vector<8x129xf32> -> vector<8x129xf32>
    %274 = vector.extract_strided_slice %273 {offsets = [0, 128], sizes = [8, 1], strides = [1, 1]} : vector<8x129xf32> to vector<8x1xf32>
    %275 = vector.broadcast %158 : vector<1x1xf32> to vector<8x1xf32>
    %276 = arith.addf %274, %275 : vector<8x1xf32>
    %277 = tpu.concatenate %186, %216, %246, %276 in 1 : vector<8x1xf32>, vector<8x1xf32>, vector<8x1xf32>, vector<8x1xf32> -> vector<8x4xf32>
    %c0_51 = arith.constant 0 : index
    %c0_52 = arith.constant 0 : index
    %278 = vector.load %arg10[%c0_51, %c0_52] : memref<8x4xf32, #tpu.memory_space<vmem>>, vector<8x4xf32>
    tpu.vector_store %arg10[%c0_51, %c0_52], %277 {strides = array<i32>} : memref<8x4xf32, #tpu.memory_space<vmem>>, vector<8x4xf32>,
    return
  }
}

</mosaic_0001>

<bundles_post_ra>
// kernel: model_forward.1
= control target key start
LH: loop header
LB: loop body
LE: loop exit
PB: predicated region body
PF: predicated region fallthrough
CT: control target
= control target key end

     0   :  { %s2224_s0 = inlined_call_operand.vmem [shape: s32[4], index: 0, kind: input, shape index: {}]   ;;  %s2225_s1 = inlined_call_operand.vmem [shape: f32[64,1], index: 1, kind: input, shape index: {}]   ;;  %s2226_s2 = inlined_call_operand.vmem [shape: f32[8,4], index: 2, kind: input, shape index: {}]   ;;  %s2227_s3 = inlined_call_operand.vmem [shape: f32[1,128], index: 3, kind: input, shape index: {}]   ;;  %s2228_s4 = inlined_call_operand.vmem [shape: f32[32,128], index: 4, kind: input, shape index: {}]   ;;  %s2229_s5 = inlined_call_operand.vmem [shape: f32[1,128], index: 5, kind: input, shape index: {}]   ;;  %s2230_s6 = inlined_call_operand.vmem [shape: f32[1,128], index: 6, kind: input, shape index: {}]   ;;  %s2231_s7 = inlined_call_operand.vmem [shape: f32[1,128], index: 7, kind: input, shape index: {}]   ;;  %s2232_s8 = inlined_call_operand.vmem [shape: f32[32,129], index: 8, kind: input, shape index: {}]   ;;  %s2233_s9 = inlined_call_operand.<no memory space> [shape: f32[1,1], index: 9, kind: input, shape index: {}]   ;;  %s2234_s10 = inlined_call_operand.vmem [shape: f32[8,4], index: 10, kind: output, shape index: {}]  }
   0x1   :  { %v15_v0 = vstv %s2233_s9 }
   0x2   :  { %16 = vst [vmem:[#allocation2] sm:$0x1] %v15_v0 }
   0x3   :  { %17 = vsyncpa [#allocation4], 0  ;;  %s24_s17 = sshll.u32 %s2224_s0, 4  ;;  %s25_s17 = int_to_ptr.vmem [resolvable:$true] %s24_s17 }
   0x4   :  { %s1869_s18 = scalar_lea.vmem %s25_s17, 16  ;;  %p1874_p1 = scmp.lt.s32.totalorder %s25_s17, %s25_s17 }
   0x5   :  { %p1870_p0 = scmp.ne.s32.totalorder %s25_s17, %s1869_s18  ;;  %p1875_p2 = scmp.lt.s32.totalorder %s1869_s18, %s1869_s18 }
   0x7   :  { %p1876_p3 = por %p1875_p2, %p1874_p1 }
   0x9   :  { %p1877_p4 = pnand %p1876_p3, %p1870_p0 }
   0xb   :  { %1880 = shalt.err (!%p1877_p4)
}
   0xc   :  { %s1883_s19 = smov [#allocation3]  }
   0xd   :  { %27 = dma.vmem_to_smem %s25_s17, 16, %s1883_s19, [#allocation4]  }
   0xe   :  { %1881 = dma.done.wait [#allocation4], 16  }
   0xf   :  { %1882 = vsyncadd [#allocation4], 4294967280 }
  0x10   :  { %49 = sfence }
  0x11   :  { %v128_v1 = vld [vmem:[%s2228_s4] sm:$0xff]  ;;  %v129_v2 = vld [vmem:[%s2228_s4 + $0x8] sm:$0xff]  ;;  %v130_v3 = vld [vmem:[%s2228_s4 + $0x10] sm:$0xff]  ;;  %v1884_v4 = vmov 0.0|0.0   ;;  %vm1885_vm0 = vmmov 0   ;;  %v1886_v7 = vmov 0.0  }
  0x12   :  { %1668 = vmatprep.subr.bf16.mxu0 %v1884_v4  ;;  %v1966_v5 = vpack.c.bf16 %v129_v2, %v128_v1  ;;  %v131_v6 = vld [vmem:[%s2228_s4 + $0x18] sm:$0xff]  ;;  %1588 = vmatprep.mubr.msk.f32.mxu0 %vm1885_vm0, %v1886_v7  ;;  %v50_v8 = vld [vmem:[%s2225_s1] sm:$0xff]  ;;  %v1887_v9 = vmov 0   ;;  %s1888_s11 = smov 64   ;;  %v51_v30 = vld [vmem:[%s2225_s1 + $0x8] sm:$0xff]  ;;  %vm132_vm1 = vcmask 261120  }
  0x13   :  { %1768 = vset.pattern.permute.xlu0 %v1887_v9  ;;  %1674 = vmatprep.subr.bf16.mxu1 %v1884_v4  ;;  %v1978_v10 = vpack.c.bf16 %v131_v6, %v130_v3  ;;  %v1999_v11 = vld [vmem:[%s2227_s3] ss:$0 sm:$0xff]  ;;  %s1889_s3 = smov 32   ;;  %v52_v51 = vld [vmem:[%s2225_s1 + $0x10] sm:$0xff]  ;;  %s1534_s21 = sld [smem:[#allocation3 + $0x1]]  ;;  %vm1496_vm5 = vcmask 7168  }
  0x14   :  { %1670 = vmatpush3.bf16.msra.mxu0 %v1966_v5  ;;  %61 = vperm.xlu0 %1768, %v50_v8   ;;  %v2005_v14 = vld [vmem:[%s2229_s5] ss:$0 sm:$0xff]  ;;  %s1893_s0 = smov 2   ;;  %s1894_s24 = smov 3   ;;  %vm1498_vm6 = vcmask 15360   ;;  %vm1500_vm7 = vcmask 23552  }
  0x15   :  { %1671 = vmatprep.subr.bf16.mxu0 %v1884_v4  ;;  %1676 = vmatpush3.bf16.msra.mxu1 %v1966_v5  ;;  %vm1502_vm8 = vcmask 31744  }
  0x16   :  { %1677 = vmatprep.subr.bf16.mxu1 %v1884_v4  ;;  %1599 = vmatprep.mubr.msk.f32.mxu1 %vm1885_vm0, %v1886_v7 }
  0x17   :  { %1769 = vset.pattern.permute.xlu1 %v1887_v9 }
  0x18   :  { %1673 = vmatpush3.bf16.msra.mxu0 %v1978_v10 }
  0x19   :  { %1679 = vmatpush3.bf16.msra.mxu1 %v1978_v10  ;;  %1680 = vmatprep.subr.bf16.mxu0 %v1884_v4  ;;  %p1256_p6 = scmp.gt.s32.totalorder %s1534_s21, 0 }
  0x1a   :  { %1686 = vmatprep.subr.bf16.mxu1 %v1884_v4 }
  0x1b   :  { %1589 = vmatmul.mubr.f32.vlgmr.msra.gmra.mrb[0].mxu0 %v1886_v7  ;;  %s1257_s22 = scalar_select %p1256_p6, 1, 0 }
  0x1c   :  { %1682 = vmatpush3.bf16.msra.mxu0 %v1966_v5  ;;  %1610 = vmatprep.mubr.msk.f32.mxu0 %vm1885_vm0, %v1886_v7 }
  0x1d   :  { %1683 = vmatprep.subr.bf16.mxu0 %v1884_v4 }
  0x20   :  { %1685 = vmatpush3.bf16.msra.mxu0 %v1978_v10 }
  0x21   :  { %1692 = vmatprep.subr.bf16.mxu0 %v1884_v4 }
  0x93   :  { %v62_v12 = vpop.permute.xlu0 %61 }
  0x94   :  { %v105_v13 = vmul.f32 %v1999_v11, %v62_v12 }
  0x96   :  { %v120_v15 = vadd.f32 %v2005_v14, %v105_v13  ;;  %v53_v13 = vld [vmem:[%s2225_s1 + $0x18] sm:$0xff] }
  0xee   :  { %v202_v16 = vpop.f32.mrb[0].mxu0 }
  0xef   :  { %v206_v17 = vadd.f32 %v202_v16, %v120_v15  ;;  %v1590_v18 = vpop.f32.mrb[1].mxu0 }
  0xf1   :  { %1773 = vtanh.f32 %v206_v17  ;;  %v1511_v20 = vmul.f32 -1.442695, %v206_v17 }
  0xf3   :  { %1775 = vpow2.f32 %v1511_v20 }
  0xfb   :  { %v1774_v19 = vpop.eup %1773 }
  0xfc   :  { %216 = vrot.lane.b32.xlu0 %v1774_v19, %s1888_s11 }
  0xfd   :  { %v1776_v21 = vpop.eup %1775 }
  0xfe   :  { %v210_v22 = vadd.f32 1.0, %v1776_v21 }
 0x100   :  { %1777 = vrcp.f32 %v210_v22 }
 0x10a   :  { %v1778_v23 = vpop.eup %1777 }
 0x10b   :  { %v214_v26 = vmul.f32 0.0, %v1778_v23 }
 0x16e   :  { %v217_v24 = vpop.permute.xlu0 %216 }
 0x16f   :  { %v219_v25 = vmul.f32 %v1778_v23, %v217_v24 }
 0x171   :  { %221 = vrot.lane.b32.xlu1 %v219_v25, %s1889_s3 }
 0x1e3   :  { %v222_v27 = vpop.permute.xlu1 %221 }
 0x1e4   :  { %v224_v28 = vadd.f32 %v222_v27, %v214_v26 }
 0x1e6   :  { %1779 = vtanh.f32 %v224_v28 }
 0x1f0   :  { %v1780_v29 = vpop.eup %1779 }
 0x1f1   :  { %227 = vrot.lane.b32.xlu1 %v1780_v29, %s1888_s11 }
 0x1f5   :  { %66 = vperm.xlu1 %1769, %v51_v30  }
 0x263   :  { %v228_v31 = vpop.permute.xlu1 %227 }
 0x264   :  { %v230_v32 = vmul.f32 %v1778_v23, %v228_v31 }
 0x266   :  { %232 = vrot.lane.b32.xlu0 %v230_v32, %s1889_s3 }
 0x274   :  { %v67_v34 = vpop.permute.xlu1 %66 }
 0x275   :  { %v106_v35 = vmul.f32 %v1999_v11, %v67_v34 }
 0x277   :  { %v121_v36 = vadd.f32 %v2005_v14, %v106_v35  ;;  %v54_v35 = vld [vmem:[%s2225_s1 + $0x20] sm:$0xff] }
 0x2d8   :  { %v233_v33 = vpop.permute.xlu0 %232 }
 0x2d9   :  { %1600 = vmatmul.mubr.msk.f32.vlgmr.msra.gmra.mrb[0].mxu1 %vm132_vm1, %v233_v33 }
 0x2da   :  { %1688 = vmatpush3.bf16.msra.mxu1 %v1966_v5  ;;  %1621 = vmatprep.mubr.msk.f32.mxu1 %vm1885_vm0, %v1886_v7 }
 0x2db   :  { %1689 = vmatprep.subr.bf16.mxu1 %v1884_v4 }
 0x2de   :  { %1691 = vmatpush3.bf16.msra.mxu1 %v1978_v10 }
 0x2df   :  { %1698 = vmatprep.subr.bf16.mxu1 %v1884_v4 }
 0x3ac   :  { %v302_v37 = vpop.f32.mrb[0].mxu1 }
 0x3ad   :  { %v306_v38 = vadd.f32 %v302_v37, %v121_v36  ;;  %v1601_v39 = vpop.f32.mrb[1].mxu1 }
 0x3af   :  { %1781 = vtanh.f32 %v306_v38  ;;  %v1513_v41 = vmul.f32 -1.442695, %v306_v38 }
 0x3b1   :  { %1783 = vpow2.f32 %v1513_v41 }
 0x3b9   :  { %v1782_v40 = vpop.eup %1781 }
 0x3ba   :  { %316 = vrot.lane.b32.xlu0 %v1782_v40, %s1888_s11 }
 0x3bb   :  { %v1784_v42 = vpop.eup %1783 }
 0x3bc   :  { %v310_v43 = vadd.f32 1.0, %v1784_v42 }
 0x3be   :  { %1785 = vrcp.f32 %v310_v43 }
 0x3c8   :  { %v1786_v44 = vpop.eup %1785 }
 0x3c9   :  { %v314_v47 = vmul.f32 %v1786_v44, %v224_v28 }
 0x42c   :  { %v317_v45 = vpop.permute.xlu0 %316 }
 0x42d   :  { %v319_v46 = vmul.f32 %v1786_v44, %v317_v45 }
 0x42f   :  { %321 = vrot.lane.b32.xlu1 %v319_v46, %s1889_s3 }
 0x4a1   :  { %v322_v48 = vpop.permute.xlu1 %321 }
 0x4a2   :  { %v324_v49 = vadd.f32 %v322_v48, %v314_v47 }
 0x4a4   :  { %1787 = vtanh.f32 %v324_v49 }
 0x4ae   :  { %v1788_v50 = vpop.eup %1787 }
 0x4af   :  { %327 = vrot.lane.b32.xlu0 %v1788_v50, %s1888_s11 }
 0x4b3   :  { %71 = vperm.xlu0 %1768, %v52_v51  }
 0x521   :  { %v328_v52 = vpop.permute.xlu0 %327 }
 0x522   :  { %v330_v53 = vmul.f32 %v1786_v44, %v328_v52 }
 0x524   :  { %332 = vrot.lane.b32.xlu1 %v330_v53, %s1889_s3 }
 0x532   :  { %v72_v55 = vpop.permute.xlu0 %71 }
 0x533   :  { %v107_v56 = vmul.f32 %v1999_v11, %v72_v55 }
 0x535   :  { %v122_v57 = vadd.f32 %v2005_v14, %v107_v56  ;;  %v55_v56 = vld [vmem:[%s2225_s1 + $0x28] sm:$0xff] }
 0x596   :  { %v333_v54 = vpop.permute.xlu1 %332 }
 0x597   :  { %1611 = vmatmul.mubr.msk.f32.vlgmr.msra.gmra.mrb[2].mxu0 %vm132_vm1, %v333_v54 }
 0x598   :  { %1694 = vmatpush3.bf16.msra.mxu0 %v1966_v5  ;;  %1632 = vmatprep.mubr.msk.f32.mxu0 %vm1885_vm0, %v1886_v7 }
 0x599   :  { %1695 = vmatprep.subr.bf16.mxu0 %v1884_v4 }
 0x59c   :  { %1697 = vmatpush3.bf16.msra.mxu0 %v1978_v10 }
 0x59d   :  { %1704 = vmatprep.subr.bf16.mxu0 %v1884_v4 }
 0x66a   :  { %v402_v58 = vpop.f32.mrb[2].mxu0 }
 0x66b   :  { %v406_v59 = vadd.f32 %v402_v58, %v122_v57  ;;  %v1612_v60 = vpop.f32.mrb[3].mxu0 }
 0x66d   :  { %1789 = vtanh.f32 %v406_v59  ;;  %v1515_v62 = vmul.f32 -1.442695, %v406_v59 }
 0x66f   :  { %1791 = vpow2.f32 %v1515_v62 }
 0x677   :  { %v1790_v61 = vpop.eup %1789 }
 0x678   :  { %416 = vrot.lane.b32.xlu1 %v1790_v61, %s1888_s11 }
 0x679   :  { %v1792_v63 = vpop.eup %1791 }
 0x67a   :  { %v410_v0 = vadd.f32 1.0, %v1792_v63 }
 0x67c   :  { %1793 = vrcp.f32 %v410_v0 }
 0x686   :  { %v1794_v1 = vpop.eup %1793 }
 0x687   :  { %v414_v6 = vmul.f32 %v1794_v1, %v324_v49 }
 0x6ea   :  { %v417_v2 = vpop.permute.xlu1 %416 }
 0x6eb   :  { %v419_v3 = vmul.f32 %v1794_v1, %v417_v2 }
 0x6ed   :  { %421 = vrot.lane.b32.xlu0 %v419_v3, %s1889_s3 }
 0x75f   :  { %v422_v8 = vpop.permute.xlu0 %421 }
 0x760   :  { %v424_v9 = vadd.f32 %v422_v8, %v414_v6 }
 0x762   :  { %1795 = vtanh.f32 %v424_v9 }
 0x76c   :  { %v1796_v12 = vpop.eup %1795 }
 0x76d   :  { %427 = vrot.lane.b32.xlu1 %v1796_v12, %s1888_s11 }
 0x771   :  { %76 = vperm.xlu1 %1769, %v53_v13  }
 0x7df   :  { %v428_v15 = vpop.permute.xlu1 %427 }
 0x7e0   :  { %v430_v16 = vmul.f32 %v1794_v1, %v428_v15 }
 0x7e2   :  { %432 = vrot.lane.b32.xlu0 %v430_v16, %s1889_s3  ;;  %v56_v16 = vld [vmem:[%s2225_s1 + $0x30] sm:$0xff] }
 0x7f0   :  { %v77_v18 = vpop.permute.xlu1 %76 }
 0x7f1   :  { %v108_v19 = vmul.f32 %v1999_v11, %v77_v18 }
 0x7f3   :  { %v123_v20 = vadd.f32 %v2005_v14, %v108_v19 }
 0x854   :  { %v433_v17 = vpop.permute.xlu0 %432 }
 0x855   :  { %1622 = vmatmul.mubr.msk.f32.vlgmr.msra.gmra.mrb[2].mxu1 %vm132_vm1, %v433_v17 }
 0x856   :  { %1700 = vmatpush3.bf16.msra.mxu1 %v1966_v5  ;;  %1643 = vmatprep.mubr.msk.f32.mxu1 %vm1885_vm0, %v1886_v7 }
 0x857   :  { %1701 = vmatprep.subr.bf16.mxu1 %v1884_v4 }
 0x85a   :  { %1703 = vmatpush3.bf16.msra.mxu1 %v1978_v10 }
 0x85b   :  { %1710 = vmatprep.subr.bf16.mxu1 %v1884_v4 }
 0x928   :  { %v502_v21 = vpop.f32.mrb[2].mxu1 }
 0x929   :  { %v506_v22 = vadd.f32 %v502_v21, %v123_v20  ;;  %v1623_v23 = vpop.f32.mrb[3].mxu1 }
 0x92b   :  { %1797 = vtanh.f32 %v506_v22  ;;  %v1517_v25 = vmul.f32 -1.442695, %v506_v22 }
 0x92d   :  { %1799 = vpow2.f32 %v1517_v25 }
 0x935   :  { %v1798_v24 = vpop.eup %1797 }
 0x936   :  { %516 = vrot.lane.b32.xlu0 %v1798_v24, %s1888_s11 }
 0x937   :  { %v1800_v26 = vpop.eup %1799 }
 0x938   :  { %v510_v27 = vadd.f32 1.0, %v1800_v26 }
 0x93a   :  { %1801 = vrcp.f32 %v510_v27 }
 0x944   :  { %v1802_v28 = vpop.eup %1801 }
 0x945   :  { %v514_v31 = vmul.f32 %v1802_v28, %v424_v9 }
 0x9a8   :  { %v517_v29 = vpop.permute.xlu0 %516 }
 0x9a9   :  { %v519_v30 = vmul.f32 %v1802_v28, %v517_v29 }
 0x9ab   :  { %521 = vrot.lane.b32.xlu1 %v519_v30, %s1889_s3 }
 0xa1d   :  { %v522_v32 = vpop.permute.xlu1 %521 }
 0xa1e   :  { %v524_v33 = vadd.f32 %v522_v32, %v514_v31 }
 0xa20   :  { %1803 = vtanh.f32 %v524_v33 }
 0xa2a   :  { %v1804_v34 = vpop.eup %1803 }
 0xa2b   :  { %527 = vrot.lane.b32.xlu0 %v1804_v34, %s1888_s11 }
 0xa2f   :  { %81 = vperm.xlu0 %1768, %v54_v35  }
 0xa9d   :  { %v528_v36 = vpop.permute.xlu0 %527 }
 0xa9e   :  { %v530_v37 = vmul.f32 %v1802_v28, %v528_v36 }
 0xaa0   :  { %532 = vrot.lane.b32.xlu1 %v530_v37, %s1889_s3  ;;  %v57_v37 = vld [vmem:[%s2225_s1 + $0x38] sm:$0xff]  ;;  %s1537_s1 = sld [smem:[#allocation3 + $0x2]] }
 0xaa6   :  { %p1375_p7 = scmp.gt.s32.totalorder %s1537_s1, 0 }
 0xaa8   :  { %s1376_s23 = scalar_select %p1375_p7, 1, 0 }
 0xaae   :  { %v82_v39 = vpop.permute.xlu0 %81 }
 0xaaf   :  { %v109_v40 = vmul.f32 %v1999_v11, %v82_v39 }
 0xab1   :  { %v124_v41 = vadd.f32 %v2005_v14, %v109_v40 }
 0xb12   :  { %v533_v38 = vpop.permute.xlu1 %532 }
 0xb13   :  { %1633 = vmatmul.mubr.msk.f32.vlgmr.msra.gmra.mrb[4].mxu0 %vm132_vm1, %v533_v38 }
 0xb14   :  { %1706 = vmatpush3.bf16.msra.mxu0 %v1966_v5  ;;  %1654 = vmatprep.mubr.msk.f32.mxu0 %vm1885_vm0, %v1886_v7 }
 0xb15   :  { %1707 = vmatprep.subr.bf16.mxu0 %v1884_v4 }
 0xb18   :  { %1709 = vmatpush3.bf16.msra.mxu0 %v1978_v10 }
 0xbe6   :  { %v602_v42 = vpop.f32.mrb[4].mxu0 }
 0xbe7   :  { %v606_v43 = vadd.f32 %v602_v42, %v124_v41  ;;  %v1634_v44 = vpop.f32.mrb[5].mxu0 }
 0xbe9   :  { %1805 = vtanh.f32 %v606_v43  ;;  %v1519_v46 = vmul.f32 -1.442695, %v606_v43 }
 0xbeb   :  { %1807 = vpow2.f32 %v1519_v46 }
 0xbf3   :  { %v1806_v45 = vpop.eup %1805 }
 0xbf4   :  { %616 = vrot.lane.b32.xlu1 %v1806_v45, %s1888_s11 }
 0xbf5   :  { %v1808_v47 = vpop.eup %1807 }
 0xbf6   :  { %v610_v48 = vadd.f32 1.0, %v1808_v47 }
 0xbf8   :  { %1809 = vrcp.f32 %v610_v48 }
 0xc02   :  { %v1810_v49 = vpop.eup %1809 }
 0xc03   :  { %v614_v52 = vmul.f32 %v1810_v49, %v524_v33 }
 0xc66   :  { %v617_v50 = vpop.permute.xlu1 %616 }
 0xc67   :  { %v619_v51 = vmul.f32 %v1810_v49, %v617_v50 }
 0xc69   :  { %621 = vrot.lane.b32.xlu0 %v619_v51, %s1889_s3 }
 0xcdb   :  { %v622_v53 = vpop.permute.xlu0 %621 }
 0xcdc   :  { %v624_v54 = vadd.f32 %v622_v53, %v614_v52 }
 0xcde   :  { %1811 = vtanh.f32 %v624_v54 }
 0xce8   :  { %v1812_v55 = vpop.eup %1811 }
 0xce9   :  { %627 = vrot.lane.b32.xlu1 %v1812_v55, %s1888_s11  ;;  %v934_v55 = vld [vmem:[%s2232_s8 + $0x8] sm:$0xff] }
 0xced   :  { %86 = vperm.xlu1 %1769, %v55_v56   ;;  %v936_v56 = vld [vmem:[%s2232_s8 + $0x18] sm:$0xff] }
 0xd5b   :  { %v628_v57 = vpop.permute.xlu1 %627 }
 0xd5c   :  { %v630_v58 = vmul.f32 %v1810_v49, %v628_v57  ;;  %v933_v57 = vld [vmem:[%s2232_s8] sm:$0xff] }
 0xd5e   :  { %632 = vrot.lane.b32.xlu0 %v630_v58, %s1889_s3  ;;  %v1716_v58 = vpack.c.bf16 %v936_v56, %v934_v55 }
 0xd60   :  { %1717 = vmatprep.subr.bf16.mxu0 %v1716_v58 }
 0xd6c   :  { %v87_v60 = vpop.permute.xlu1 %86 }
 0xd6d   :  { %v110_v61 = vmul.f32 %v1999_v11, %v87_v60  ;;  %v938_v60 = vld [vmem:[%s2232_s8 + $0x28] sm:$0xff] }
 0xd6f   :  { %v125_v62 = vadd.f32 %v2005_v14, %v110_v61  ;;  %v940_v61 = vld [vmem:[%s2232_s8 + $0x38] sm:$0xff] }
 0xdd0   :  { %v633_v59 = vpop.permute.xlu0 %632 }
 0xdd1   :  { %1644 = vmatmul.mubr.msk.f32.vlgmr.msra.gmra.mrb[4].mxu1 %vm132_vm1, %v633_v59  ;;  %v935_v59 = vld [vmem:[%s2232_s8 + $0x10] sm:$0xff] }
 0xdd2   :  { %1712 = vmatpush3.bf16.msra.mxu1 %v1966_v5  ;;  %1665 = vmatprep.mubr.msk.f32.mxu1 %vm1885_vm0, %v1886_v7 }
 0xdd3   :  { %1713 = vmatprep.subr.bf16.mxu1 %v1884_v4 }
 0xdd6   :  { %1715 = vmatpush3.bf16.msra.mxu1 %v1978_v10 }
 0xdd7   :  { %1725 = vmatprep.subr.bf16.mxu1 %v1716_v58 }
 0xea4   :  { %v702_v63 = vpop.f32.mrb[4].mxu1 }
 0xea5   :  { %v706_v0 = vadd.f32 %v702_v63, %v125_v62  ;;  %v1645_v1 = vpop.f32.mrb[5].mxu1  ;;  %v2128_v62 = vpack.c.bf16 %v935_v59, %v933_v57  ;;  %v2130_v63 = vpack.c.bf16 %v940_v61, %v938_v60 }
 0xea6   :  { %v939_v1 = vld [vmem:[%s2232_s8 + $0x30] sm:$0xff] }
 0xea7   :  { %1813 = vtanh.f32 %v706_v0  ;;  %v1521_v5 = vmul.f32 -1.442695, %v706_v0  ;;  %v937_v0 = vld [vmem:[%s2232_s8 + $0x20] sm:$0xff] }
 0xea9   :  { %1815 = vpow2.f32 %v1521_v5 }
 0xeb1   :  { %v1814_v2 = vpop.eup %1813 }
 0xeb2   :  { %716 = vrot.lane.b32.xlu0 %v1814_v2, %s1888_s11  ;;  %v2139_v2 = vpack.c.bf16 %v939_v1, %v937_v0 }
 0xeb3   :  { %v1816_v3 = vpop.eup %1815 }
 0xeb4   :  { %v710_v6 = vadd.f32 1.0, %v1816_v3 }
 0xeb6   :  { %1817 = vrcp.f32 %v710_v6 }
 0xec0   :  { %v1818_v4 = vpop.eup %1817 }
 0xec1   :  { %v714_v9 = vmul.f32 %v1818_v4, %v624_v54 }
 0xf24   :  { %v717_v8 = vpop.permute.xlu0 %716 }
 0xf25   :  { %v719_v10 = vmul.f32 %v1818_v4, %v717_v8  ;;  %v2156_v8 = vld [vmem:[%s2230_s6] ss:$0 sm:$0xff]  ;;  %s1139_s6 = sld [smem:[#allocation3]] }
 0xf27   :  { %721 = vrot.lane.b32.xlu1 %v719_v10, %s1889_s3 }
 0xf2b   :  { %p1140_p5 = scmp.gt.s32.totalorder %s1139_s6, 0 }
 0xf99   :  { %v722_v12 = vpop.permute.xlu1 %721 }
 0xf9a   :  { %v724_v13 = vadd.f32 %v722_v12, %v714_v9  ;;  %v2162_v9 = vld [vmem:[%s2231_s7] ss:$0 sm:$0xff]  ;;  %s1142_s7 = scalar_select %p1140_p5, 1, 0 }
 0xf9c   :  { %1819 = vtanh.f32 %v724_v13 }
 0xfa6   :  { %v1820_v15 = vpop.eup %1819 }
 0xfa7   :  { %727 = vrot.lane.b32.xlu0 %v1820_v15, %s1888_s11 }
 0xfab   :  { %91 = vperm.xlu0 %1768, %v56_v16  }
0x1019   :  { %v728_v17 = vpop.permute.xlu0 %727 }
0x101a   :  { %v730_v18 = vmul.f32 %v1818_v4, %v728_v17 }
0x101c   :  { %732 = vrot.lane.b32.xlu1 %v730_v18, %s1889_s3 }
0x102a   :  { %v92_v20 = vpop.permute.xlu0 %91 }
0x102b   :  { %v111_v21 = vmul.f32 %v1999_v11, %v92_v20 }
0x102d   :  { %v126_v22 = vadd.f32 %v2005_v14, %v111_v21 }
0x108e   :  { %v733_v19 = vpop.permute.xlu1 %732 }
0x108f   :  { %1655 = vmatmul.mubr.msk.f32.vlgmr.msra.gmra.mrb[6].mxu0 %vm132_vm1, %v733_v19 }
0x1090   :  { %1011 = vmatprep.mubr.f32.mxu0 %v1886_v7  ;;  %1719 = vmatpush1.bf16.msra.mxu0 %v2128_v62 }
0x1091   :  { %1721 = vmatprep.subr.bf16.mxu0 %v2130_v63 }
0x1094   :  { %1723 = vmatpush1.bf16.msra.mxu0 %v2139_v2 }
0x1095   :  { %1733 = vmatprep.subr.bf16.mxu0 %v1716_v58 }
0x1162   :  { %v802_v23 = vpop.f32.mrb[6].mxu0 }
0x1163   :  { %v806_v24 = vadd.f32 %v802_v23, %v126_v22  ;;  %v1656_v25 = vpop.f32.mrb[7].mxu0 }
0x1165   :  { %1821 = vtanh.f32 %v806_v24  ;;  %v1523_v27 = vmul.f32 -1.442695, %v806_v24 }
0x1167   :  { %1823 = vpow2.f32 %v1523_v27 }
0x116f   :  { %v1822_v26 = vpop.eup %1821 }
0x1170   :  { %816 = vrot.lane.b32.xlu1 %v1822_v26, %s1888_s11 }
0x1171   :  { %v1824_v28 = vpop.eup %1823 }
0x1172   :  { %v810_v29 = vadd.f32 1.0, %v1824_v28 }
0x1174   :  { %1825 = vrcp.f32 %v810_v29 }
0x117e   :  { %v1826_v30 = vpop.eup %1825 }
0x117f   :  { %v814_v33 = vmul.f32 %v1826_v30, %v724_v13 }
0x11e2   :  { %v817_v31 = vpop.permute.xlu1 %816 }
0x11e3   :  { %v819_v32 = vmul.f32 %v1826_v30, %v817_v31  ;;  %v1143_v31 = vstv %s1142_s7 }
0x11e4   :  { %vm1144_vm2 = vcmp.eq.s32.totalorder %v1143_v31, 1 }
0x11e5   :  { %821 = vrot.lane.b32.xlu0 %v819_v32, %s1889_s3  ;;  %v2174_v32 = vld [vmem:[#allocation2] ss:$0 sm:$0xff] }
0x1257   :  { %v822_v34 = vpop.permute.xlu0 %821 }
0x1258   :  { %v824_v35 = vadd.f32 %v822_v34, %v814_v33 }
0x125a   :  { %1827 = vtanh.f32 %v824_v35 }
0x1264   :  { %v1828_v36 = vpop.eup %1827 }
0x1265   :  { %827 = vrot.lane.b32.xlu1 %v1828_v36, %s1888_s11 }
0x1269   :  { %96 = vperm.xlu1 %1769, %v57_v37  }
0x12d7   :  { %v828_v38 = vpop.permute.xlu1 %827 }
0x12d8   :  { %v830_v39 = vmul.f32 %v1826_v30, %v828_v38 }
0x12da   :  { %832 = vrot.lane.b32.xlu0 %v830_v39, %s1889_s3 }
0x12e8   :  { %v97_v41 = vpop.permute.xlu1 %96 }
0x12e9   :  { %v112_v42 = vmul.f32 %v1999_v11, %v97_v41  ;;  %v1023_v10 = vmul.f32 %v2156_v8, %v97_v41 }
0x12eb   :  { %v127_v43 = vadd.f32 %v2005_v14, %v112_v42  ;;  %v1030_v12 = vadd.f32 %v2162_v9, %v1023_v10 }
0x134c   :  { %v833_v40 = vpop.permute.xlu0 %832 }
0x134d   :  { %1666 = vmatmul.mubr.msk.f32.vlgmr.msra.gmra.mrb[6].mxu1 %vm132_vm1, %v833_v40 }
0x134e   :  { %1125 = vmatprep.mubr.f32.mxu1 %v1886_v7  ;;  %1727 = vmatpush1.bf16.msra.mxu1 %v2128_v62 }
0x134f   :  { %1729 = vmatprep.subr.bf16.mxu1 %v2130_v63 }
0x1352   :  { %1731 = vmatpush1.bf16.msra.mxu1 %v2139_v2 }
0x1353   :  { %1741 = vmatprep.subr.bf16.mxu1 %v1716_v58 }
0x1420   :  { %v902_v44 = vpop.f32.mrb[6].mxu1 }
0x1421   :  { %v906_v45 = vadd.f32 %v902_v44, %v127_v43  ;;  %v1667_v46 = vpop.f32.mrb[7].mxu1 }
0x1423   :  { %1829 = vtanh.f32 %v906_v45  ;;  %v1525_v48 = vmul.f32 -1.442695, %v906_v45 }
0x1425   :  { %1831 = vpow2.f32 %v1525_v48 }
0x142d   :  { %v1830_v47 = vpop.eup %1829 }
0x142e   :  { %916 = vrot.lane.b32.xlu0 %v1830_v47, %s1888_s11 }
0x142f   :  { %v1832_v49 = vpop.eup %1831 }
0x1430   :  { %v910_v50 = vadd.f32 1.0, %v1832_v49 }
0x1432   :  { %1833 = vrcp.f32 %v910_v50 }
0x143c   :  { %v1834_v51 = vpop.eup %1833 }
0x143d   :  { %v914_v11 = vmul.f32 %v1834_v51, %v824_v35  ;;  %v2179_v35 = vld [vmem:[%s2226_s2] sm:$0xff]  ;;  %s1891_s2 = smov 1  }
0x14a0   :  { %v917_v52 = vpop.permute.xlu0 %916 }
0x14a1   :  { %v919_v53 = vmul.f32 %v1834_v51, %v917_v52 }
0x14a3   :  { %921 = vrot.lane.b32.xlu1 %v919_v53, %s1889_s3 }
0x1515   :  { %v922_v54 = vpop.permute.xlu1 %921 }
0x1516   :  { %v924_v14 = vadd.f32 %v922_v54, %v914_v11 }
0x1518   :  { %1835 = vtanh.f32 %v924_v14 }
0x1522   :  { %v1836_v5 = vpop.eup %1835 }
0x1523   :  { %927 = vrot.lane.b32.xlu0 %v1836_v5, %s1888_s11 }
0x1595   :  { %v928_v3 = vpop.permute.xlu0 %927 }
0x1596   :  { %v930_v6 = vmul.f32 %v1834_v51, %v928_v3 }
0x1598   :  { %943 = vrot.lane.b32.xlu1 %v930_v6, %s1889_s3 }
0x160a   :  { %v944_v4 = vpop.permute.xlu1 %943 }
0x160b   :  { %1526 = vmatmul.mubr.msk.f32.vlgmr.msra.gmra.mrb[8].mxu0 %vm132_vm1, %v944_v4 }
0x160c   :  { %1735 = vmatpush1.bf16.msra.mxu0 %v2128_v62  ;;  %1247 = vmatprep.mubr.f32.mxu0 %v1886_v7 }
0x160d   :  { %1737 = vmatprep.subr.bf16.mxu0 %v2130_v63 }
0x1610   :  { %1739 = vmatpush1.bf16.msra.mxu0 %v2139_v2 }
0x1611   :  { %1749 = vmatprep.subr.bf16.mxu0 %v1716_v58  ;;  %v1258_v58 = vstv %s1257_s22 }
0x1612   :  { %vm1259_vm3 = vcmp.eq.s32.totalorder %v1258_v58, 1 }
0x16de   :  { %v1013_v13 = vpop.f32.mrb[8].mxu0 }
0x16df   :  { %v1031_v15 = vadd.f32 %v1030_v12, %v1013_v13  ;;  %v1015_v16 = vpop.f32.mrb[9].mxu0 }
0x16e1   :  { %1837 = vtanh.f32 %v1031_v15  ;;  %v1529_v18 = vmul.f32 -1.442695, %v1031_v15 }
0x16e3   :  { %1839 = vpow2.f32 %v1529_v18 }
0x16eb   :  { %v1838_v17 = vpop.eup %1837 }
0x16ec   :  { %1041 = vrot.lane.b32.xlu0 %v1838_v17, %s1888_s11 }
0x16ed   :  { %v1840_v19 = vpop.eup %1839 }
0x16ee   :  { %v1035_v20 = vadd.f32 1.0, %v1840_v19  ;;  %v1892_v19 = vmov 2  }
0x16ef   :  { %1771 = vset.pattern.permute.xlu1 %v1892_v19 }
0x16f0   :  { %1841 = vrcp.f32 %v1035_v20 }
0x16fa   :  { %v1842_v21 = vpop.eup %1841 }
0x16fb   :  { %v1039_v24 = vmul.f32 %v1842_v21, %v924_v14  ;;  %v1890_v14 = vmov 1  }
0x175e   :  { %v1042_v22 = vpop.permute.xlu0 %1041 }
0x175f   :  { %v1044_v23 = vmul.f32 %v1842_v21, %v1042_v22 }
0x1761   :  { %1046 = vrot.lane.b32.xlu1 %v1044_v23, %s1889_s3  ;;  %v1377_v23 = vstv %s1376_s23 }
0x1762   :  { %vm1378_vm4 = vcmp.eq.s32.totalorder %v1377_v23, 1 }
0x17d3   :  { %v1047_v25 = vpop.permute.xlu1 %1046 }
0x17d4   :  { %v1049_v26 = vadd.f32 %v1047_v25, %v1039_v24 }
0x17d6   :  { %1843 = vtanh.f32 %v1049_v26 }
0x17e0   :  { %v1844_v27 = vpop.eup %1843 }
0x17e1   :  { %1052 = vrot.lane.b32.xlu0 %v1844_v27, %s1888_s11 }
0x1853   :  { %v1053_v28 = vpop.permute.xlu0 %1052 }
0x1854   :  { %v1055_v29 = vmul.f32 %v1842_v21, %v1053_v28 }
0x1856   :  { %1057 = vrot.lane.b32.xlu1 %v1055_v29, %s1889_s3 }
0x18c8   :  { %v1058_v30 = vpop.permute.xlu1 %1057 }
0x18c9   :  { %1530 = vmatmul.mubr.msk.f32.vlgmr.msra.gmra.mrb[8].mxu1 %vm132_vm1, %v1058_v30 }
0x18ca   :  { %1743 = vmatpush1.bf16.msra.mxu1 %v2128_v62  ;;  %1366 = vmatprep.mubr.f32.mxu1 %v1886_v7 }
0x18cb   :  { %1745 = vmatprep.subr.bf16.mxu1 %v2130_v63 }
0x18ce   :  { %1747 = vmatpush1.bf16.msra.mxu1 %v2139_v2 }
0x199c   :  { %v1127_v33 = vpop.f32.mrb[8].mxu1 }
0x199d   :  { %v1129_v34 = vpop.f32.mrb[9].mxu1 }
0x199e   :  { %v2182_v36 = vadd.f32 %v2174_v32, %v1129_v34 }
0x19a0   :  { %v1145_v37 = vsel %vm1144_vm2, %v2179_v35, %v2182_v36 }
0x19a1   :  { %1148 = vperm.xlu0 %1768, %v1145_v37  }
0x19a5   :  { %1770 = vset.pattern.permute.xlu0 %v1890_v14 }
0x1a20   :  { %v1149_v38 = vpop.permute.xlu0 %1148 }
0x1a21   :  { %v1151_v39 = vmul.f32 %v2156_v8, %v1149_v38 }
0x1a23   :  { %v1152_v40 = vadd.f32 %v2162_v9, %v1151_v39 }
0x1a25   :  { %v1153_v41 = vadd.f32 %v1152_v40, %v1127_v33 }
0x1a27   :  { %1845 = vtanh.f32 %v1153_v41  ;;  %v1532_v43 = vmul.f32 -1.442695, %v1153_v41 }
0x1a29   :  { %1847 = vpow2.f32 %v1532_v43 }
0x1a31   :  { %v1846_v42 = vpop.eup %1845 }
0x1a32   :  { %1163 = vrot.lane.b32.xlu1 %v1846_v42, %s1888_s11 }
0x1a33   :  { %v1848_v44 = vpop.eup %1847 }
0x1a34   :  { %v1157_v45 = vadd.f32 1.0, %v1848_v44 }
0x1a36   :  { %1849 = vrcp.f32 %v1157_v45 }
0x1a40   :  { %v1850_v46 = vpop.eup %1849 }
0x1a41   :  { %v1161_v49 = vmul.f32 %v1850_v46, %v1049_v26 }
0x1aa4   :  { %v1164_v47 = vpop.permute.xlu1 %1163 }
0x1aa5   :  { %v1166_v48 = vmul.f32 %v1850_v46, %v1164_v47 }
0x1aa7   :  { %1168 = vrot.lane.b32.xlu0 %v1166_v48, %s1889_s3 }
0x1b19   :  { %v1169_v50 = vpop.permute.xlu0 %1168 }
0x1b1a   :  { %v1171_v51 = vadd.f32 %v1169_v50, %v1161_v49 }
0x1b1c   :  { %1851 = vtanh.f32 %v1171_v51 }
0x1b26   :  { %v1852_v52 = vpop.eup %1851 }
0x1b27   :  { %1174 = vrot.lane.b32.xlu1 %v1852_v52, %s1888_s11 }
0x1b99   :  { %v1175_v53 = vpop.permute.xlu1 %1174 }
0x1b9a   :  { %v1177_v11 = vmul.f32 %v1850_v46, %v1175_v53 }
0x1b9c   :  { %1179 = vrot.lane.b32.xlu0 %v1177_v11, %s1889_s3 }
0x1c0e   :  { %v1180_v54 = vpop.permute.xlu0 %1179 }
0x1c0f   :  { %1533 = vmatmul.mubr.msk.f32.vlgmr.msra.gmra.mrb[10].mxu0 %vm132_vm1, %v1180_v54 }
0x1c10   :  { %1751 = vmatpush1.bf16.msra.mxu0 %v2128_v62  ;;  %1485 = vmatprep.mubr.f32.mxu0 %v1886_v7 }
0x1c11   :  { %1753 = vmatprep.subr.bf16.mxu0 %v2130_v63 }
0x1c14   :  { %1755 = vmatpush1.bf16.msra.mxu0 %v2139_v2 }
0x1ce2   :  { %v1249_v55 = vpop.f32.mrb[10].mxu0 }
0x1ce3   :  { %v1251_v56 = vpop.f32.mrb[11].mxu0 }
0x1ce4   :  { %v1254_v57 = vadd.f32 %v2174_v32, %v1251_v56 }
0x1ce6   :  { %1261 = vrot.lane.b32.xlu1 %v1254_v57, %s1891_s2 }
0x1d58   :  { %v2198_v59 = vpop.permute.xlu1 %1261 }
0x1d59   :  { %v1264_v7 = vsel %vm1259_vm3, %v2179_v35, %v2198_v59  ;;  %v1497_v47 = vsel %vm1496_vm5, %v2182_v36, %v2198_v59 }
0x1d5a   :  { %1267 = vperm.xlu0 %1770, %v1264_v7  }
0x1d5e   :  { %1772 = vset.pattern.permute.xlu0 %v1892_v19 }
0x1dd9   :  { %v1268_v60 = vpop.permute.xlu0 %1267 }
0x1dda   :  { %v1270_v61 = vmul.f32 %v2156_v8, %v1268_v60 }
0x1ddc   :  { %v1271_v62 = vadd.f32 %v2162_v9, %v1270_v61 }
0x1dde   :  { %v1272_v63 = vadd.f32 %v1271_v62, %v1249_v55 }
0x1de0   :  { %1853 = vtanh.f32 %v1272_v63  ;;  %v1535_v1 = vmul.f32 -1.442695, %v1272_v63 }
0x1de2   :  { %1855 = vpow2.f32 %v1535_v1 }
0x1dea   :  { %v1854_v0 = vpop.eup %1853 }
0x1deb   :  { %1282 = vrot.lane.b32.xlu1 %v1854_v0, %s1888_s11 }
0x1dec   :  { %v1856_v2 = vpop.eup %1855 }
0x1ded   :  { %v1276_v5 = vadd.f32 1.0, %v1856_v2 }
0x1def   :  { %1857 = vrcp.f32 %v1276_v5 }
0x1df9   :  { %v1858_v3 = vpop.eup %1857 }
0x1dfa   :  { %v1280_v10 = vmul.f32 %v1858_v3, %v1171_v51 }
0x1e5d   :  { %v1283_v6 = vpop.permute.xlu1 %1282 }
0x1e5e   :  { %v1285_v4 = vmul.f32 %v1858_v3, %v1283_v6 }
0x1e60   :  { %1287 = vrot.lane.b32.xlu1 %v1285_v4, %s1889_s3 }
0x1ed2   :  { %v1288_v12 = vpop.permute.xlu1 %1287 }
0x1ed3   :  { %v1290_v13 = vadd.f32 %v1288_v12, %v1280_v10 }
0x1ed5   :  { %1859 = vtanh.f32 %v1290_v13 }
0x1edf   :  { %v1860_v15 = vpop.eup %1859 }
0x1ee0   :  { %1293 = vrot.lane.b32.xlu0 %v1860_v15, %s1888_s11 }
0x1f52   :  { %v1294_v16 = vpop.permute.xlu0 %1293 }
0x1f53   :  { %v1296_v17 = vmul.f32 %v1858_v3, %v1294_v16 }
0x1f55   :  { %1298 = vrot.lane.b32.xlu1 %v1296_v17, %s1889_s3 }
0x1fc7   :  { %v1299_v18 = vpop.permute.xlu1 %1298 }
0x1fc8   :  { %1536 = vmatmul.mubr.msk.f32.vlgmr.msra.gmra.mrb[10].mxu1 %vm132_vm1, %v1299_v18 }
0x209b   :  { %v1368_v20 = vpop.f32.mrb[10].mxu1 }
0x209c   :  { %v1370_v21 = vpop.f32.mrb[11].mxu1 }
0x209d   :  { %v1373_v22 = vadd.f32 %v2174_v32, %v1370_v21 }
0x209f   :  { %1380 = vrot.lane.b32.xlu0 %v1373_v22, %s1893_s0 }
0x2111   :  { %v1381_v24 = vpop.permute.xlu0 %1380 }
0x2112   :  { %v1383_v25 = vsel %vm1378_vm4, %v2179_v35, %v1381_v24  ;;  %v1499_v48 = vsel %vm1498_vm6, %v1497_v47, %v1381_v24 }
0x2113   :  { %1386 = vperm.xlu1 %1771, %v1383_v25  }
0x2192   :  { %v1387_v26 = vpop.permute.xlu1 %1386 }
0x2193   :  { %v1389_v27 = vmul.f32 %v2156_v8, %v1387_v26 }
0x2195   :  { %v1390_v28 = vadd.f32 %v2162_v9, %v1389_v27 }
0x2197   :  { %v1391_v29 = vadd.f32 %v1390_v28, %v1368_v20 }
0x2199   :  { %1861 = vtanh.f32 %v1391_v29  ;;  %v1538_v31 = vmul.f32 -1.442695, %v1391_v29 }
0x219b   :  { %1863 = vpow2.f32 %v1538_v31 }
0x21a3   :  { %v1862_v30 = vpop.eup %1861 }
0x21a4   :  { %1401 = vrot.lane.b32.xlu0 %v1862_v30, %s1888_s11 }
0x21a5   :  { %v1864_v33 = vpop.eup %1863 }
0x21a6   :  { %v1395_v34 = vadd.f32 1.0, %v1864_v33 }
0x21a8   :  { %1865 = vrcp.f32 %v1395_v34 }
0x21b2   :  { %v1866_v37 = vpop.eup %1865 }
0x21b3   :  { %v1399_v35 = vmul.f32 %v1866_v37, %v1290_v13 }
0x2216   :  { %v1402_v38 = vpop.permute.xlu0 %1401 }
0x2217   :  { %v1404_v39 = vmul.f32 %v1866_v37, %v1402_v38 }
0x2219   :  { %1406 = vrot.lane.b32.xlu1 %v1404_v39, %s1889_s3 }
0x228b   :  { %v1407_v40 = vpop.permute.xlu1 %1406 }
0x228c   :  { %v1409_v8 = vadd.f32 %v1407_v40, %v1399_v35 }
0x228e   :  { %1867 = vtanh.f32 %v1409_v8 }
0x2298   :  { %v1868_v9 = vpop.eup %1867 }
0x2299   :  { %1412 = vrot.lane.b32.xlu0 %v1868_v9, %s1888_s11 }
0x230b   :  { %v1413_v41 = vpop.permute.xlu0 %1412 }
0x230c   :  { %v1415_v42 = vmul.f32 %v1866_v37, %v1413_v41 }
0x230e   :  { %1417 = vrot.lane.b32.xlu1 %v1415_v42, %s1889_s3 }
0x2380   :  { %v1418_v43 = vpop.permute.xlu1 %1417 }
0x2381   :  { %1539 = vmatmul.mubr.msk.f32.vlgmr.msra.gmra.mrb[12].mxu0 %vm132_vm1, %v1418_v43 }
0x2454   :  { %v1487_v44 = vpop.f32.mrb[12].mxu0 }
0x2455   :  { %v1488_v45 = vpop.f32.mrb[13].mxu0 }
0x2456   :  { %v1491_v46 = vadd.f32 %v2174_v32, %v1488_v45 }
0x2458   :  { %1493 = vrot.lane.b32.xlu0 %v1491_v46, %s1894_s24 }
0x24ca   :  { %v1494_v49 = vpop.permute.xlu0 %1493 }
0x24cb   :  { %v1501_v50 = vsel %vm1500_vm7, %v1499_v48, %v1494_v49 }
0x24cc   :  { %1503 = vst.msk [vmem:[%s2234_s10] sm:$0xff] %vm1502_vm8, %v1501_v50 }
0x24cd   :  { %1508 = vsyncpa [#allocation4], 1 }

</bundles_post_ra>
